<compile_context>
chip_gen: v7x
topology: tpu7x:2x2x1
jax: 0.10.0
libtpu: 0.0.40
codegen_flags: <defaults>
</compile_context>

<pallas_src>
import functools

import jax
import jax.numpy as jnp
from jax.experimental import pallas as pl
from jax.experimental.pallas import tpu as pltpu


def _round_up(x, m):
    return (x + m - 1) // m * m


def _instance_encoder_kernel(claim_ref, evidence_ref, meta_ref, out_ref, *, D, M, W):
    """Writes [c | e | c - e | dot(c, e) | meta | 0-pad] into one lane-dense row block."""
    c = claim_ref[...]                       # (TB, D)
    e = evidence_ref[...]                    # (TB, D)
    m = meta_ref[...]                        # (TB, M)
    out_dtype = out_ref.dtype

    cf = c.astype(jnp.float32)
    ef = e.astype(jnp.float32)

    total = 3 * D + 1 + M
    # Segment 1: claim (pass-through).
    out_ref[:, 0:D] = c.astype(out_dtype)
    # Segment 2: evidence (pass-through).
    out_ref[:, D:2 * D] = e.astype(out_dtype)
    # Segment 3: elementwise difference (f32 math, cast back).
    out_ref[:, 2 * D:3 * D] = (cf - ef).astype(out_dtype)
    # Segment 4: per-row dot product. VPU mul + XLU lane-reduce, f32 accumulation.
    out_ref[:, 3 * D:3 * D + 1] = jnp.sum(cf * ef, axis=-1, keepdims=True).astype(out_dtype)
    # Segment 5: metadata (pass-through).
    out_ref[:, 3 * D + 1:total] = m.astype(out_dtype)
    # Zero the lane padding so the output block is fully defined.
    if total < W:
        out_ref[:, total:W] = jnp.zeros((out_ref.shape[0], W - total), out_dtype)


def instance_encoder_batched(claim, evidence, metadata, *, row_tile=None):
    """Batched instanceEncoder: (B, D), (B, D), (B, M) -> (B, 3*D + 1 + M)."""
    B, D = claim.shape
    Bm, M = metadata.shape
    assert evidence.shape == (B, D) and Bm == B
    dtype = claim.dtype
    # torch.cat requires matching dtypes; enforce by casting to claim's dtype.
    evidence = evidence.astype(dtype)
    metadata = metadata.astype(dtype)

    total = 3 * D + 1 + M
    W = _round_up(total, 128)                # lane-dense output width

    if row_tile is None:
        row_tile = min(256, _round_up(B, 8))  # sublane-aligned row tile
    row_tile = _round_up(row_tile, 8)
    B_pad = _round_up(B, row_tile)
    if B_pad != B:
        pad = B_pad - B
        claim = jnp.pad(claim, ((0, pad), (0, 0)))
        evidence = jnp.pad(evidence, ((0, pad), (0, 0)))
        metadata = jnp.pad(metadata, ((0, pad), (0, 0)))

    kernel = functools.partial(_instance_encoder_kernel, D=D, M=M, W=W)
    out = pl.pallas_call(
        kernel,
        out_shape=jax.ShapeDtypeStruct((B_pad, W), dtype),
        grid_spec=pltpu.PrefetchScalarGridSpec(
            num_scalar_prefetch=0,
            grid=(B_pad // row_tile,),
            in_specs=[
                pl.BlockSpec((row_tile, D), lambda i: (i, 0)),
                pl.BlockSpec((row_tile, D), lambda i: (i, 0)),
                pl.BlockSpec((row_tile, M), lambda i: (i, 0)),
            ],
            out_specs=pl.BlockSpec((row_tile, W), lambda i: (i, 0)),
        ),
        compiler_params=pltpu.CompilerParams(
            dimension_semantics=("parallel",)),
    )(claim, evidence, metadata)

    return out[:B, :total]


def instance_encoder(claim_encoding, evidence_encoding, metadata_encoding):
    """JAX/Pallas equivalent of instanceEncoder.forward (single 1-D instance).

    Returns (3*D + 1 + M,):
      [claim, evidence, claim - evidence, dot(claim, evidence), metadata]
    """
    out = instance_encoder_batched(
        claim_encoding[None, :], evidence_encoding[None, :], metadata_encoding[None, :])
    return out[0]


if __name__ == "__main__":
    # Module has no learnable parameters (empty __init__), nothing to initialize.
    D = 32   # claim / evidence encoding dim
    M = 16   # metadata encoding dim

    key = jax.random.PRNGKey(0)
    k1, k2, k3, k4 = jax.random.split(key, 4)
    claim = jax.random.normal(k1, (D,), dtype=jnp.float32)
    evidence = jax.random.normal(k2, (D,), dtype=jnp.float32)
    metadata = jax.random.normal(k3, (M,), dtype=jnp.float32)

    # Single-instance path (exactly the torch forward semantics).
    out = instance_encoder(claim, evidence, metadata)
    out = jax.block_until_ready(out)
    ref = jnp.concatenate([
        claim, evidence, claim - evidence,
        jnp.dot(claim, evidence)[None], metadata])
    assert out.shape == (3 * D + 1 + M,)
    assert jnp.allclose(out, ref, atol=1e-5, rtol=1e-5)

    # Batched path (exercises grid / row padding), B not a multiple of 8.
    B = 10
    cb = jax.random.normal(k4, (B, D), dtype=jnp.float32)
    eb = jax.random.normal(k1, (B, D), dtype=jnp.float32)
    mb = jax.random.normal(k2, (B, M), dtype=jnp.float32)
    outb = jax.block_until_ready(instance_encoder_batched(cb, eb, mb))
    refb = jnp.concatenate(
        [cb, eb, cb - eb, jnp.sum(cb * eb, axis=-1, keepdims=True), mb], axis=-1)
    assert outb.shape == (B, 3 * D + 1 + M)
    assert jnp.allclose(outb, refb, atol=1e-5, rtol=1e-5)

    print("KERNEL_OK")
</pallas_src>

<mosaic_0001>
module attributes {stable_mosaic.version = 11 : i64} {
  func.func @_instance_encoder_kernel(%arg0: i32, %arg1: memref<8x32xf32, #tpu.memory_space<vmem>>, %arg2: memref<8x32xf32, #tpu.memory_space<vmem>>, %arg3: memref<8x16xf32, #tpu.memory_space<vmem>>, %arg4: memref<8x128xf32, #tpu.memory_space<vmem>>) attributes {dimension_semantics = [#tpu.dimension_semantics<parallel>], iteration_bounds = array<i64: 1>, scalar_prefetch = 0 : i64, scratch_operands = 0 : i64, tpu.core_type = #tpu.core_type<tc>, window_params = [{transform_indices = @transform_0, window_bounds = array<i64: 8, 32>}, {transform_indices = @transform_1, window_bounds = array<i64: 8, 32>}, {transform_indices = @transform_2, window_bounds = array<i64: 8, 16>}, {transform_indices = @transform_3, window_bounds = array<i64: 8, 128>}]} {
    %c0 = arith.constant 0 : index
    %c0_0 = arith.constant 0 : index
    %0 = vector.load %arg1[%c0, %c0_0] : memref<8x32xf32, #tpu.memory_space<vmem>>, vector<8x32xf32>
    %c0_1 = arith.constant 0 : index
    %c0_2 = arith.constant 0 : index
    %1 = vector.load %arg2[%c0_1, %c0_2] : memref<8x32xf32, #tpu.memory_space<vmem>>, vector<8x32xf32>
    %c0_3 = arith.constant 0 : index
    %c0_4 = arith.constant 0 : index
    %2 = vector.load %arg3[%c0_3, %c0_4] : memref<8x16xf32, #tpu.memory_space<vmem>>, vector<8x16xf32>
    %c0_5 = arith.constant 0 : index
    %c0_6 = arith.constant 0 : index
    %3 = vector.load %arg4[%c0_5, %c0_6] : memref<8x128xf32, #tpu.memory_space<vmem>>, vector<8x32xf32>
    tpu.vector_store %arg4[%c0_5, %c0_6], %0 {strides = array<i32>} : memref<8x128xf32, #tpu.memory_space<vmem>>, vector<8x32xf32>,
    %c0_7 = arith.constant 0 : index
    %c32 = arith.constant 32 : index
    %4 = vector.load %arg4[%c0_7, %c32] : memref<8x128xf32, #tpu.memory_space<vmem>>, vector<8x32xf32>
    tpu.vector_store %arg4[%c0_7, %c32], %1 {strides = array<i32>} : memref<8x128xf32, #tpu.memory_space<vmem>>, vector<8x32xf32>,
    %5 = arith.subf %0, %1 : vector<8x32xf32>
    %c0_8 = arith.constant 0 : index
    %c64 = arith.constant 64 : index
    %6 = vector.load %arg4[%c0_8, %c64] : memref<8x128xf32, #tpu.memory_space<vmem>>, vector<8x32xf32>
    tpu.vector_store %arg4[%c0_8, %c64], %5 {strides = array<i32>} : memref<8x128xf32, #tpu.memory_space<vmem>>, vector<8x32xf32>,
    %7 = arith.mulf %0, %1 : vector<8x32xf32>
    %cst = arith.constant dense<0.000000e+00> : vector<8xf32>
    %8 = vector.multi_reduction <add>, %7, %cst [1] : vector<8x32xf32> to vector<8xf32>
    %9 = vector.shape_cast %8 : vector<8xf32> to vector<8x1xf32>
    %c0_9 = arith.constant 0 : index
    %c96 = arith.constant 96 : index
    %10 = vector.load %arg4[%c0_9, %c96] : memref<8x128xf32, #tpu.memory_space<vmem>>, vector<8x1xf32>
    tpu.vector_store %arg4[%c0_9, %c96], %9 {strides = array<i32>} : memref<8x128xf32, #tpu.memory_space<vmem>>, vector<8x1xf32>,
    %c0_10 = arith.constant 0 : index
    %c97 = arith.constant 97 : index
    %11 = vector.load %arg4[%c0_10, %c97] : memref<8x128xf32, #tpu.memory_space<vmem>>, vector<8x16xf32>
    tpu.vector_store %arg4[%c0_10, %c97], %2 {strides = array<i32>} : memref<8x128xf32, #tpu.memory_space<vmem>>, vector<8x16xf32>,
    %cst_11 = arith.constant 0.000000e+00 : f32
    %12 = vector.broadcast %cst_11 : f32 to vector<8x15xf32>
    %c0_12 = arith.constant 0 : index
    %c113 = arith.constant 113 : index
    %13 = vector.load %arg4[%c0_12, %c113] : memref<8x128xf32, #tpu.memory_space<vmem>>, vector<8x15xf32>
    tpu.vector_store %arg4[%c0_12, %c113], %12 {strides = array<i32>} : memref<8x128xf32, #tpu.memory_space<vmem>>, vector<8x15xf32>,
    return
  }
  func.func @transform_0(%arg0: i32) -> (i32, i32) {
    %c0_i32 = arith.constant 0 : i32
    %c0_i32_0 = arith.constant 0 : i32
    return %arg0, %c0_i32 : i32, i32
  }
  func.func @transform_1(%arg0: i32) -> (i32, i32) {
    %c0_i32 = arith.constant 0 : i32
    %c0_i32_0 = arith.constant 0 : i32
    return %arg0, %c0_i32 : i32, i32
  }
  func.func @transform_2(%arg0: i32) -> (i32, i32) {
    %c0_i32 = arith.constant 0 : i32
    %c0_i32_0 = arith.constant 0 : i32
    return %arg0, %c0_i32 : i32, i32
  }
  func.func @transform_3(%arg0: i32) -> (i32, i32) {
    %c0_i32 = arith.constant 0 : i32
    %c0_i32_0 = arith.constant 0 : i32
    return %arg0, %c0_i32 : i32, i32
  }
}

</mosaic_0001>

<bundles_post_ra>
// kernel: tpu_custom_call.1
= control target key start
LH: loop header
LB: loop body
LE: loop exit
PB: predicated region body
PF: predicated region fallthrough
CT: control target
= control target key end

     0   :  { %8 = vsyncpa [#allocation3], 0  ;;  %s276_s0 = inlined_call_operand.hbm [shape: f32[8,32], index: 0, kind: input, shape index: {}]   ;;  %s277_s1 = inlined_call_operand.hbm [shape: f32[8,32], index: 1, kind: input, shape index: {}]   ;;  %s278_s2 = inlined_call_operand.hbm [shape: f32[8,16], index: 2, kind: input, shape index: {}]   ;;  %s279_s3 = inlined_call_operand.hbm [shape: f32[8,128], index: 3, kind: output, shape index: {}]  }
   0x1   :  { %9 = vsyncpa [#allocation6], 0 }
   0x2   :  { %10 = vsyncpa [#allocation4], 0  ;;  %s200_s12 = smov [#allocation5]   ;;  %s201_s14 = smov [#allocation2]  }
   0x3   :  { %s27_s13 = sshll.u32 %s200_s12, 4  ;;  %s17_s15 = sshll.u32 %s201_s14, 4  ;;  %s28_s13 = int_to_ptr.vmem [resolvable:$true] %s27_s13  ;;  %s18_s15 = int_to_ptr.vmem [resolvable:$true] %s17_s15 }
   0x4   :  { %s106_s18 = scalar_lea.hbm %s277_s1, 128 }
   0x5   :  { %p107_p0 = scmp.ne.s32.totalorder %s277_s1, %s106_s18  ;;  %p110_p1 = scmp.lt.u32.totalorder %s106_s18, %s277_s1 }
   0x7   :  { %p112_p2 = pnand %p110_p1, %p107_p0 }
   0x9   :  { %115 = shalt.err (!%p112_p2)
}
   0xa   :  { %s116_s23 = scalar_lea.vmem %s28_s13, 128  ;;  %p121_p4 = scmp.lt.s32.totalorder %s28_s13, %s28_s13 }
   0xb   :  { %p117_p3 = scmp.ne.s32.totalorder %s28_s13, %s116_s23  ;;  %p122_p5 = scmp.lt.s32.totalorder %s116_s23, %s116_s23 }
   0xd   :  { %p123_p6 = por %p122_p5, %p121_p4 }
   0xf   :  { %p124_p7 = pnand %p123_p6, %p117_p3 }
  0x11   :  { %127 = shalt.err (!%p124_p7)
}
  0x12   :  { %30 = dma.hbm_to_vmem [thread:$0]  %s277_s1, 128, %s28_s13, [#allocation6]  }
  0x13   :  { %s128_s28 = scalar_lea.hbm %s276_s0, 128 }
  0x14   :  { %p129_p8 = scmp.ne.s32.totalorder %s276_s0, %s128_s28  ;;  %p132_p9 = scmp.lt.u32.totalorder %s128_s28, %s276_s0 }
  0x16   :  { %p134_p10 = pnand %p132_p9, %p129_p8 }
  0x18   :  { %137 = shalt.err (!%p134_p10)
}
  0x19   :  { %s138_s6 = scalar_lea.vmem %s18_s15, 128  ;;  %p143_p12 = scmp.lt.s32.totalorder %s18_s15, %s18_s15 }
  0x1a   :  { %p139_p11 = scmp.ne.s32.totalorder %s18_s15, %s138_s6  ;;  %p144_p13 = scmp.lt.s32.totalorder %s138_s6, %s138_s6 }
  0x1c   :  { %p145_p0 = por %p144_p13, %p143_p12 }
  0x1e   :  { %p146_p1 = pnand %p145_p0, %p139_p11 }
  0x20   :  { %149 = shalt.err (!%p146_p1)
}
  0x21   :  { %20 = dma.hbm_to_vmem [thread:$0]  %s276_s0, 128, %s18_s15, [#allocation3]  }
  0x22   :  { %s202_s8 = smov [#allocation7]   ;;  %s150_s12 = scalar_lea.hbm %s278_s2, 128 }
  0x23   :  { %s37_s9 = sshll.u32 %s202_s8, 4  ;;  %p151_p2 = scmp.ne.s32.totalorder %s278_s2, %s150_s12  ;;  %s38_s9 = int_to_ptr.vmem [resolvable:$true] %s37_s9 }
  0x24   :  { %p154_p3 = scmp.lt.u32.totalorder %s150_s12, %s278_s2 }
  0x26   :  { %p156_p4 = pnand %p154_p3, %p151_p2 }
  0x28   :  { %159 = shalt.err (!%p156_p4)
}
  0x29   :  { %s160_s18 = scalar_lea.vmem %s38_s9, 128  ;;  %p165_p6 = scmp.lt.s32.totalorder %s38_s9, %s38_s9 }
  0x2a   :  { %p161_p5 = scmp.ne.s32.totalorder %s38_s9, %s160_s18  ;;  %p166_p7 = scmp.lt.s32.totalorder %s160_s18, %s160_s18 }
  0x2c   :  { %p167_p8 = por %p166_p7, %p165_p6 }
  0x2e   :  { %p168_p9 = pnand %p167_p8, %p161_p5 }
  0x30   :  { %171 = shalt.err (!%p168_p9)
}
  0x31   :  { %40 = dma.hbm_to_vmem [thread:$0]  %s278_s2, 128, %s38_s9, [#allocation6]  }
  0x32   :  { %194 = dma.done.wait [#allocation3], 128  }
  0x33   :  { %195 = vsyncadd [#allocation3], 4294967168 }
  0x34   :  { %196 = dma.done.wait [#allocation6], 256  }
  0x35   :  { %197 = vsyncadd [#allocation6], 4294967040  ;;  %v50_v0 = vld [vmem:[#allocation2] sm:$0xff]  ;;  %v51_v1 = vld [vmem:[#allocation5] sm:$0xff]  ;;  %vm53_vm0 = vcmask 261120   ;;  %s203_s19 = smov 64  }
  0x36   :  { %v68_v2 = vmul.f32 %v51_v1, %v50_v0  ;;  %54 = vst.msk [vmem:[#allocation8] sm:$0xff] %vm53_vm0, %v50_v0  ;;  %v61_v3 = vsub.f32 %v50_v0, %v51_v1  ;;  %v52_v5 = vld [vmem:[#allocation7] sm:$0xff]  ;;  %s204_s20 = smov 97   ;;  %s205_s21 = smov 32   ;;  %vm59_vm1 = vcmask 523520   ;;  %vm66_vm2 = vcmask 785920  }
  0x37   :  { %vm72_vm3 = vcmask 794368   ;;  %s206_s2 = smov [#allocation8]   ;;  %vm78_vm4 = vcmask 925448   ;;  %vm80_vm5 = vcmask 1048456   ;;  %v207_v10 = vmov 0.0  }
  0x38   :  { %v69_v4 = vsel %vm53_vm0, %v68_v2, 0.0  ;;  %63 = vrot.lane.b32.xlu1 %v61_v3, %s203_s19  ;;  %s88_s22 = sshll.u32 %s206_s2, 4  ;;  %s89_s22 = int_to_ptr.vmem [resolvable:$true] %s88_s22 }
  0x39   :  { %70 = vadd.xlane.f32.xlu0 %v69_v4  ;;  %s172_s23 = scalar_lea.vmem %s89_s22, 128  ;;  %p177_p11 = scmp.lt.s32.totalorder %s89_s22, %s89_s22 }
  0x3a   :  { %p173_p10 = scmp.ne.s32.totalorder %s89_s22, %s172_s23  ;;  %p178_p12 = scmp.lt.s32.totalorder %s172_s23, %s172_s23 }
  0x3c   :  { %75 = vrot.lane.b32.xlu1 %v52_v5, %s204_s20  ;;  %p179_p13 = por %p178_p12, %p177_p11 }
  0x3e   :  { %p180_p0 = pnand %p179_p13, %p173_p10 }
  0x4f   :  { %56 = vrot.lane.b32.xlu0 %v51_v1, %s205_s21 }
  0xaa   :  { %v64_v6 = vpop.permute.xlu1 %63 }
  0xae   :  { %v76_v9 = vpop.permute.xlu1 %75 }
  0xc6   :  { %v71_v7 = vpop.xlane.xlu0 %70 }
  0xca   :  { %v57_v8 = vpop.permute.xlu0 %56 }
  0xcb   :  { %60 = vst.msk [vmem:[#allocation8] sm:$0xff] %vm59_vm1, %v57_v8 }
  0xcc   :  { %67 = vst.msk [vmem:[#allocation8] sm:$0xff] %vm66_vm2, %v64_v6 }
  0xcd   :  { %73 = vst.msk [vmem:[#allocation8] sm:$0xff] %vm72_vm3, %v71_v7 }
  0xce   :  { %79 = vst.msk [vmem:[#allocation8] sm:$0xff] %vm78_vm4, %v76_v9 }
  0xcf   :  { %81 = vst.msk [vmem:[#allocation8] sm:$0xff] %vm80_vm5, %v207_v10 }
  0xd0   :  { %183 = shalt.err (!%p180_p0)
}
  0xd1   :  { %s184_s26 = scalar_lea.hbm %s279_s3, 128 }
  0xd2   :  { %p185_p1 = scmp.ne.s32.totalorder %s279_s3, %s184_s26  ;;  %p188_p2 = scmp.lt.u32.totalorder %s184_s26, %s279_s3 }
  0xd4   :  { %p190_p3 = pnand %p188_p2, %p185_p1 }
  0xd6   :  { %193 = shalt.err (!%p190_p3)
}
  0xd7   :  { %91 = dma.vmem_to_hbm [thread:$0]  %s89_s22, 128, %s279_s3, [#allocation4]  }
  0xd8   :  { %198 = dma.done.wait [#allocation4], 128  }
  0xd9   :  { %199 = vsyncadd [#allocation4], 4294967168 }
  0xda   :  { %95 = vsyncpa [#allocation3], 1 }
  0xdb   :  { %96 = vsyncpa [#allocation6], 1 }
  0xdc   :  { %97 = vsyncpa [#allocation4], 1 }

</bundles_post_ra>
